<compile_context>
chip_gen: v7x
topology: tpu7x:2x2x1
jax: 0.10.0
libtpu: 0.0.40
codegen_flags: <defaults>
</compile_context>

<pallas_src>
import jax
import jax.numpy as jnp
from jax.experimental import pallas as pl
from jax.experimental.pallas import tpu as pltpu


def attention_kernel(dec_ref, lis_ref, score_ref, ctx_ref):
    # dec_ref:   (G, 1, D)  decoder queries (query length 1)
    # lis_ref:   (G, T, D)  listener features
    # score_ref: (G, T)     softmax attention scores
    # ctx_ref:   (G, D)     context vectors
    dec = dec_ref[...].astype(jnp.float32)   # (G, 1, D), tiny -> free f32 upcast
    lis = lis_ref[...]                        # (G, T, D)

    # energy[g, t] = sum_d dec[g, 0, d] * lis[g, t, d]
    # VPU multiply (broadcast over T) + cross-lane reduce; f32 accumulation via
    # dtype promotion.  No MXU matvec, no materialized transpose.
    energy = jnp.sum(lis * dec, axis=-1)      # (G, T), f32

    # Numerically stable softmax over time, kept in f32 (no bf16 VPU/EUP on v5e).
    m = jnp.max(energy, axis=-1, keepdims=True)          # (G, 1)
    e = jnp.exp(energy - m)                               # (G, T)
    denom = jnp.sum(e, axis=-1, keepdims=True)            # (G, 1)
    # denom is only G scalars -> exact reciprocal is effectively free.
    score = e * pl.reciprocal(denom, approx=False)        # (G, T), f32

    score_ref[...] = score.astype(score_ref.dtype)

    # context[g, d] = sum_t score[g, t] * lis[g, t, d]
    # VPU multiply (f32 via promotion) + cross-sublane reduce over T.
    ctx = jnp.sum(lis * score[:, :, None], axis=1)         # (G, D), f32
    ctx_ref[...] = ctx.astype(ctx_ref.dtype)


def _choose_batch_block(B, T, D, itemsize, target_bytes=8 * 1024 * 1024):
    """Batch rows per grid step: ~target_bytes listener tile, sublane-aligned."""
    per_row = max(1, T * D * itemsize)
    g = max(1, target_bytes // per_row)
    if g >= B or B <= 8:
        # One block covering the whole batch: block dims == array dims -> always legal.
        return B
    g = max(8, (g // 8) * 8)  # multiple of 8 -> sublane-aligned (G,T)/(G,D) outputs
    # Prefer an even number of grid steps (v7x shards the "parallel" axis over
    # 2 TensorCores) without shrinking the tile below half of the target.
    cand = g
    while cand >= max(8, g // 2):
        if -(-B // cand) % 2 == 0:
            return cand
        cand -= 8
    return g


@jax.jit
def attention(decoder_state, listener_feature):
    """decoder_state (B,1,D), listener_feature (B,T,D) -> (score (B,T), context (B,D))."""
    B, Q, D = decoder_state.shape
    _, T, _ = listener_feature.shape
    assert Q == 1
    dtype = decoder_state.dtype
    itemsize = jnp.dtype(dtype).itemsize

    G = _choose_batch_block(B, T, D, itemsize)
    grid = (pl.cdiv(B, G),)   # ragged last block allowed: OOB writes are masked

    score, ctx = pl.pallas_call(
        attention_kernel,
        out_shape=(
            jax.ShapeDtypeStruct((B, T), dtype),
            jax.ShapeDtypeStruct((B, D), dtype),
        ),
        grid_spec=pltpu.PrefetchScalarGridSpec(
            num_scalar_prefetch=0,
            grid=grid,
            in_specs=[
                pl.BlockSpec((G, 1, D), lambda b: (b, 0, 0)),
                pl.BlockSpec((G, T, D), lambda b: (b, 0, 0)),
            ],
            out_specs=[
                pl.BlockSpec((G, T), lambda b: (b, 0)),
                pl.BlockSpec((G, D), lambda b: (b, 0)),
            ],
        ),
        compiler_params=pltpu.CompilerParams(
            dimension_semantics=("parallel",),
            vmem_limit_bytes=48 * 1024 * 1024,
        ),
    )(decoder_state, listener_feature)

    return score, ctx


def attention_ref(decoder_state, listener_feature):
    # Pure-JAX reference mirroring the PyTorch forward.
    energy = jnp.einsum("bqd,btd->bqt", decoder_state, listener_feature)[:, 0, :]
    score = jax.nn.softmax(energy, axis=-1)
    context = jnp.sum(listener_feature * score[:, :, None], axis=1)
    return score, context


if __name__ == "__main__":
    root = jax.random.PRNGKey(0)

    def run_case(case_key, B, T, D):
        k1, k2 = jax.random.split(case_key)
        dec = jax.random.normal(k1, (B, 1, D), dtype=jnp.float32)
        lis = jax.random.normal(k2, (B, T, D), dtype=jnp.float32)

        score, ctx = attention(dec, lis)
        jax.block_until_ready((score, ctx))

        score_r, ctx_r = attention_ref(dec, lis)
        assert score.shape == (B, T) and ctx.shape == (B, D)
        assert jnp.allclose(score, score_r, atol=1e-5, rtol=1e-5)
        assert jnp.allclose(ctx, ctx_r, atol=1e-4, rtol=1e-4)

    keys = jax.random.split(root, 2)
    # Small shape consistent with the module (batch=2, seq=8, hidden=32): single block.
    run_case(keys[0], 2, 8, 32)
    # Larger shape exercising the multi-step ragged grid path (G=16, grid=2).
    run_case(keys[1], 20, 256, 512)

    print("KERNEL_OK")
</pallas_src>

<mosaic_0001>
module attributes {stable_mosaic.version = 11 : i64} {
  func.func @attention_kernel(%arg0: i32, %arg1: memref<2x1x32xf32, #tpu.memory_space<vmem>>, %arg2: memref<2x8x32xf32, #tpu.memory_space<vmem>>, %arg3: memref<2x8xf32, #tpu.memory_space<vmem>>, %arg4: memref<2x32xf32, #tpu.memory_space<vmem>>) attributes {dimension_semantics = [#tpu.dimension_semantics<parallel>], iteration_bounds = array<i64: 1>, scalar_prefetch = 0 : i64, scratch_operands = 0 : i64, tpu.core_type = #tpu.core_type<tc>, window_params = [{transform_indices = @transform_0, window_bounds = array<i64: 2, 1, 32>}, {transform_indices = @transform_1, window_bounds = array<i64: 2, 8, 32>}, {transform_indices = @transform_2, window_bounds = array<i64: 2, 8>}, {transform_indices = @transform_3, window_bounds = array<i64: 2, 32>}]} {
    %c0 = arith.constant 0 : index
    %c0_0 = arith.constant 0 : index
    %c0_1 = arith.constant 0 : index
    %0 = vector.load %arg1[%c0, %c0_0, %c0_1] : memref<2x1x32xf32, #tpu.memory_space<vmem>>, vector<2x1x32xf32>
    %c0_2 = arith.constant 0 : index
    %c0_3 = arith.constant 0 : index
    %c0_4 = arith.constant 0 : index
    %1 = vector.load %arg2[%c0_2, %c0_3, %c0_4] : memref<2x8x32xf32, #tpu.memory_space<vmem>>, vector<2x8x32xf32>
    %2 = vector.broadcast %0 : vector<2x1x32xf32> to vector<2x8x32xf32>
    %3 = arith.mulf %1, %2 : vector<2x8x32xf32>
    %cst = arith.constant dense<0.000000e+00> : vector<2x8xf32>
    %4 = vector.multi_reduction <add>, %3, %cst [2] : vector<2x8x32xf32> to vector<2x8xf32>
    %cst_5 = arith.constant dense<0xFF800000> : vector<2xf32>
    %5 = vector.multi_reduction <maximumf>, %4, %cst_5 [1] : vector<2x8xf32> to vector<2xf32>
    %6 = vector.shape_cast %5 : vector<2xf32> to vector<2x1xf32>
    %7 = vector.broadcast %6 : vector<2x1xf32> to vector<2x8xf32>
    %8 = arith.subf %4, %7 : vector<2x8xf32>
    %9 = math.exp %8 : vector<2x8xf32>
    %cst_6 = arith.constant dense<0.000000e+00> : vector<2xf32>
    %10 = vector.multi_reduction <add>, %9, %cst_6 [1] : vector<2x8xf32> to vector<2xf32>
    %11 = vector.shape_cast %10 : vector<2xf32> to vector<2x1xf32>
    %12 = tpu.reciprocal %11 : vector<2x1xf32> -> vector<2x1xf32>
    %13 = vector.broadcast %12 : vector<2x1xf32> to vector<2x8xf32>
    %14 = arith.mulf %9, %13 : vector<2x8xf32>
    %c0_7 = arith.constant 0 : index
    %c0_8 = arith.constant 0 : index
    %15 = vector.load %arg3[%c0_7, %c0_8] : memref<2x8xf32, #tpu.memory_space<vmem>>, vector<2x8xf32>
    tpu.vector_store %arg3[%c0_7, %c0_8], %14 {strides = array<i32>} : memref<2x8xf32, #tpu.memory_space<vmem>>, vector<2x8xf32>,
    %16 = vector.shape_cast %14 : vector<2x8xf32> to vector<2x8x1xf32>
    %17 = vector.broadcast %16 : vector<2x8x1xf32> to vector<2x8x32xf32>
    %18 = arith.mulf %1, %17 : vector<2x8x32xf32>
    %cst_9 = arith.constant dense<0.000000e+00> : vector<2x32xf32>
    %19 = vector.multi_reduction <add>, %18, %cst_9 [1] : vector<2x8x32xf32> to vector<2x32xf32>
    %c0_10 = arith.constant 0 : index
    %c0_11 = arith.constant 0 : index
    %20 = vector.load %arg4[%c0_10, %c0_11] : memref<2x32xf32, #tpu.memory_space<vmem>>, vector<2x32xf32>
    tpu.vector_store %arg4[%c0_10, %c0_11], %19 {strides = array<i32>} : memref<2x32xf32, #tpu.memory_space<vmem>>, vector<2x32xf32>,
    return
  }
  func.func @transform_0(%arg0: i32) -> (i32, i32, i32) {
    %c0_i32 = arith.constant 0 : i32
    %c0_i32_0 = arith.constant 0 : i32
    %c0_i32_1 = arith.constant 0 : i32
    return %arg0, %c0_i32, %c0_i32_0 : i32, i32, i32
  }
  func.func @transform_1(%arg0: i32) -> (i32, i32, i32) {
    %c0_i32 = arith.constant 0 : i32
    %c0_i32_0 = arith.constant 0 : i32
    %c0_i32_1 = arith.constant 0 : i32
    return %arg0, %c0_i32, %c0_i32_0 : i32, i32, i32
  }
  func.func @transform_2(%arg0: i32) -> (i32, i32) {
    %c0_i32 = arith.constant 0 : i32
    %c0_i32_0 = arith.constant 0 : i32
    return %arg0, %c0_i32 : i32, i32
  }
  func.func @transform_3(%arg0: i32) -> (i32, i32) {
    %c0_i32 = arith.constant 0 : i32
    %c0_i32_0 = arith.constant 0 : i32
    return %arg0, %c0_i32 : i32, i32
  }
}

</mosaic_0001>

<bundles_post_ra>
// kernel: attention.1
= control target key start
LH: loop header
LB: loop body
LE: loop exit
PB: predicated region body
PF: predicated region fallthrough
CT: control target
= control target key end

     0   :  { %9 = vsyncpa [#allocation3], 0  ;;  %s415_s0 = inlined_call_operand.hbm [shape: f32[2,1,32], index: 0, kind: input, shape index: {}]   ;;  %s416_s1 = inlined_call_operand.hbm [shape: f32[2,8,32], index: 1, kind: input, shape index: {}]   ;;  %s417_s2 = inlined_call_operand.hbm [shape: f32[2,8], index: 2, kind: output, shape index: {0}]   ;;  %s418_s3 = inlined_call_operand.hbm [shape: f32[2,32], index: 3, kind: output, shape index: {1}]  }
   0x1   :  { %10 = vsyncpa [#allocation6], 0 }
   0x2   :  { %11 = vsyncpa [#allocation4], 0 }
   0x3   :  { %12 = vsyncpa [#allocation9], 0  ;;  %s327_s12 = smov [#allocation2]   ;;  %s231_s16 = scalar_lea.hbm %s415_s0, 32 }
   0x4   :  { %s18_s13 = sshll.u32 %s327_s12, 4  ;;  %p232_p0 = scmp.ne.s32.totalorder %s415_s0, %s231_s16  ;;  %s19_s13 = int_to_ptr.vmem [resolvable:$true] %s18_s13 }
   0x5   :  { %p235_p1 = scmp.lt.u32.totalorder %s231_s16, %s415_s0 }
   0x7   :  { %p237_p2 = pnand %p235_p1, %p232_p0 }
   0x9   :  { %240 = shalt.err (!%p237_p2)
}
   0xa   :  { %s241_s21 = scalar_lea.vmem %s19_s13, 32  ;;  %p246_p4 = scmp.lt.s32.totalorder %s19_s13, %s19_s13 }
   0xb   :  { %p242_p3 = scmp.ne.s32.totalorder %s19_s13, %s241_s21  ;;  %p247_p5 = scmp.lt.s32.totalorder %s241_s21, %s241_s21 }
   0xd   :  { %p248_p6 = por %p247_p5, %p246_p4 }
   0xf   :  { %p249_p7 = pnand %p248_p6, %p242_p3 }
  0x11   :  { %252 = shalt.err (!%p249_p7)
}
  0x12   :  { %s328_s22 = smov 16   ;;  %s329_s23 = smov 1  }
  0x13   :  { %24 = dma.hbm_to_vmem [thread:$0]  %s415_s0, 32, %s19_s13, [#allocation3], %s328_s22, %s328_s22, %s329_s23  }
  0x14   :  { %s330_s26 = smov [#allocation5]   ;;  %s253_s30 = scalar_lea.hbm %s416_s1, 256 }
  0x15   :  { %s30_s27 = sshll.u32 %s330_s26, 4  ;;  %p254_p8 = scmp.ne.s32.totalorder %s416_s1, %s253_s30  ;;  %s31_s27 = int_to_ptr.vmem [resolvable:$true] %s30_s27 }
  0x16   :  { %p257_p9 = scmp.lt.u32.totalorder %s253_s30, %s416_s1 }
  0x18   :  { %p259_p10 = pnand %p257_p9, %p254_p8 }
  0x1a   :  { %262 = shalt.err (!%p259_p10)
}
  0x1b   :  { %s263_s8 = scalar_lea.vmem %s31_s27, 256  ;;  %p268_p12 = scmp.lt.s32.totalorder %s31_s27, %s31_s27 }
  0x1c   :  { %p264_p11 = scmp.ne.s32.totalorder %s31_s27, %s263_s8  ;;  %p269_p13 = scmp.lt.s32.totalorder %s263_s8, %s263_s8 }
  0x1e   :  { %p270_p0 = por %p269_p13, %p268_p12 }
  0x20   :  { %p271_p1 = pnand %p270_p0, %p264_p11 }
  0x22   :  { %274 = shalt.err (!%p271_p1)
}
  0x23   :  { %s331_s0 = smov 128   ;;  %s332_s9 = smov 8  }
  0x24   :  { %36 = dma.hbm_to_vmem [thread:$0]  %s416_s1, 256, %s31_s27, [#allocation6], %s331_s0, %s331_s0, %s332_s9  }
  0x25   :  { %319 = dma.done.wait [#allocation3], 32  }
  0x26   :  { %320 = vsyncadd [#allocation3], 4294967264 }
  0x27   :  { %321 = dma.done.wait [#allocation6], 256  }
  0x28   :  { %322 = vsyncadd [#allocation6], 4294967040  ;;  %v212_v0 = vld [vmem:[#allocation2] ss:$0 sm:$0xff]  ;;  %v45_v1 = vld [vmem:[#allocation5] sm:$0xff]  ;;  %vm61_vm0 = vcmask 261120   ;;  %v70_v8 = vlaneseq }
  0x29   :  { %v213_v2 = vld [vmem:[#allocation2 + $0x1] ss:$0 sm:$0xff]  ;;  %v59_v3 = vmul.f32 %v212_v0, %v45_v1  ;;  %v46_v4 = vld [vmem:[#allocation5 + $0x8] sm:$0xff]  ;;  %vm80_vm1 = vcmask 1041409   ;;  %vm83_vm2 = vcmask 58368   ;;  %v333_v18 = vmov 0  }
  0x2a   :  { %v60_v5 = vmul.f32 %v213_v2, %v46_v4  ;;  %v71_v9 = vand.u32 127, %v70_v8  ;;  %v73_v10 = vshrl.u32 %v70_v8, 7  ;;  %224 = vset.pattern.permute.xlu0 %v333_v18  ;;  %223 = vset.pattern.permute.xlu1 %v333_v18  ;;  %s334_s1 = smov [#allocation7]  }
  0x2b   :  { %v62_v6 = vsel %vm61_vm0, %v59_v3, 0.0  ;;  %s188_s12 = sshll.u32 %s334_s1, 4  ;;  %s189_s12 = int_to_ptr.vmem [resolvable:$true] %s188_s12 }
  0x2c   :  { %63 = vadd.xlane.f32.xlu0 %v62_v6  ;;  %v65_v7 = vsel %vm61_vm0, %v60_v5, 0.0  ;;  %v74_v12 = vsub.s32 %v71_v9, %v73_v10  ;;  %v90_v19 = vsub.s32 0, %v73_v10  ;;  %v94_v20 = vsub.s32 1, %v73_v10  ;;  %s275_s13 = scalar_lea.vmem %s189_s12, 32  ;;  %p280_p3 = scmp.lt.s32.totalorder %s189_s12, %s189_s12 }
  0x2d   :  { %p276_p2 = scmp.ne.s32.totalorder %s189_s12, %s275_s13  ;;  %p281_p4 = scmp.lt.s32.totalorder %s275_s13, %s275_s13 }
  0x2f   :  { %p282_p5 = por %p281_p4, %p280_p3 }
  0x30   :  { %66 = vadd.xlane.f32.xlu0 %v65_v7 }
  0x31   :  { %p283_p6 = pnand %p282_p5, %p276_p2 }
  0xb9   :  { %v64_v11 = vpop.xlane.xlu0 %63 }
  0xba   :  { %v75_v14 = vrot.slane %v64_v11, %v74_v12 }
  0xbd   :  { %v67_v13 = vpop.xlane.xlu0 %66 }
  0xbe   :  { %v79_v15 = vrot.slane %v67_v13, %v74_v12 }
  0xc0   :  { %v81_v16 = vsel %vm80_vm1, %v79_v15, %v75_v14 }
  0xc1   :  { %v84_v17 = vsel %vm83_vm2, %v81_v16, -inf }
  0xc2   :  { %85 = vmax.xlane.f32.xlu1 %v84_v17 }
 0x14f   :  { %v86_v21 = vpop.xlane.xlu1 %85 }
 0x150   :  { %v91_v22 = vrot.slane %v86_v21, %v90_v19  ;;  %v95_v23 = vrot.slane %v86_v21, %v94_v20 }
 0x152   :  { %v98_v24 = vsub.f32 %v64_v11, %v91_v22  ;;  %v99_v25 = vsub.f32 %v67_v13, %v95_v23 }
 0x154   :  { %v100_v26 = vmul.f32 1.442695, %v98_v24  ;;  %v102_v27 = vmul.f32 1.442695, %v99_v25 }
 0x156   :  { %225 = vpow2.f32 %v100_v26 }
 0x157   :  { %227 = vpow2.f32 %v102_v27 }
 0x160   :  { %v226_v28 = vpop.eup %225 }
 0x161   :  { %v228_v29 = vpop.eup %227  ;;  %107 = vperm.xlu1 %223, %v226_v28  }
 0x162   :  { %110 = vperm.xlu0 %224, %v228_v29  }
 0x1e0   :  { %v108_v30 = vpop.permute.xlu1 %107 }
 0x1e1   :  { %v111_v31 = vpop.permute.xlu0 %110  ;;  %v115_v32 = vrot.slane %v108_v30, %v74_v12 }
 0x1e2   :  { %v119_v33 = vrot.slane %v111_v31, %v74_v12 }
 0x1e4   :  { %v120_v34 = vsel %vm80_vm1, %v119_v33, %v115_v32 }
 0x1e5   :  { %v122_v35 = vsel %vm83_vm2, %v120_v34, 0.0 }
 0x1e6   :  { %123 = vadd.xlane.f32.xlu1 %v122_v35 }
 0x273   :  { %v124_v36 = vpop.xlane.xlu1 %123 }
 0x274   :  { %229 = vrcp.f32 %v124_v36 }
 0x27e   :  { %v230_v37 = vpop.eup %229 }
 0x27f   :  { %v130_v38 = vrot.slane %v230_v37, %v90_v19  ;;  %v134_v40 = vrot.slane %v230_v37, %v94_v20 }
 0x281   :  { %v137_v39 = vmul.f32 %v226_v28, %v130_v38  ;;  %v138_v41 = vmul.f32 %v228_v29, %v134_v40 }
 0x283   :  { %142 = vperm.xlu0 %224, %v137_v39  }
 0x287   :  { %145 = vperm.xlu0 %224, %v138_v41  }
 0x302   :  { %v143_v42 = vpop.permute.xlu0 %142 }
 0x303   :  { %v160_v43 = vmul.f32 %v143_v42, %v45_v1  ;;  %v150_v47 = vrot.slane %v143_v42, %v74_v12 }
 0x305   :  { %v162_v44 = vsel %vm61_vm0, %v160_v43, 0.0 }
 0x306   :  { %v163_v45 = vrot.slane %v162_v44, 4  ;;  %v146_v46 = vpop.permute.xlu0 %145 }
 0x307   :  { %v154_v48 = vrot.slane %v146_v46, %v74_v12  ;;  %v161_v49 = vmul.f32 %v146_v46, %v46_v4 }
 0x308   :  { %v164_v50 = vadd.f32 %v163_v45, %v162_v44 }
 0x309   :  { %v169_v51 = vsel %vm61_vm0, %v161_v49, 0.0  ;;  %v155_v52 = vsel %vm80_vm1, %v154_v48, %v150_v47 }
 0x30a   :  { %v165_v53 = vrot.slane %v164_v50, 2  ;;  %v170_v54 = vrot.slane %v169_v51, 4  ;;  %157 = vst.msk [vmem:[#allocation7] sm:$0x3] %vm83_vm2, %v155_v52 }
 0x30b   :  { %286 = shalt.err (!%p283_p6)
}
 0x30c   :  { %s287_s16 = scalar_lea.hbm %s417_s2, 32 }
 0x30d   :  { %p288_p7 = scmp.ne.s32.totalorder %s417_s2, %s287_s16  ;;  %p291_p8 = scmp.lt.u32.totalorder %s287_s16, %s417_s2 }
 0x30f   :  { %p293_p9 = pnand %p291_p8, %p288_p7 }
 0x311   :  { %296 = shalt.err (!%p293_p9)
}
 0x312   :  { %191 = dma.vmem_to_hbm [thread:$0]  %s189_s12, 32, %s417_s2, [#allocation4]   ;;  %v166_v55 = vadd.f32 %v165_v53, %v164_v50  ;;  %v171_v56 = vadd.f32 %v170_v54, %v169_v51  ;;  %vm180_vm3 = vcmask 254976  }
 0x313   :  { %s335_s23 = smov [#allocation8]  }
 0x314   :  { %v172_v57 = vrot.slane %v171_v56, 2  ;;  %v167_v58 = vrot.slane %v166_v55, 1  ;;  %s198_s24 = sshll.u32 %s335_s23, 4  ;;  %s199_s24 = int_to_ptr.vmem [resolvable:$true] %s198_s24 }
 0x315   :  { %s297_s25 = scalar_lea.vmem %s199_s24, 32  ;;  %p302_p11 = scmp.lt.s32.totalorder %s199_s24, %s199_s24 }
 0x316   :  { %v173_v59 = vadd.f32 %v172_v57, %v171_v56  ;;  %v168_v62 = vadd.f32 %v167_v58, %v166_v55  ;;  %p298_p10 = scmp.ne.s32.totalorder %s199_s24, %s297_s25  ;;  %p303_p12 = scmp.lt.s32.totalorder %s297_s25, %s297_s25 }
 0x318   :  { %v174_v60 = vrot.slane %v173_v59, 1  ;;  %p304_p13 = por %p303_p12, %p302_p11 }
 0x31a   :  { %v175_v61 = vadd.f32 %v174_v60, %v173_v59  ;;  %p305_p0 = pnand %p304_p13, %p298_p10 }
 0x31c   :  { %v178_v63 = vsel %vm80_vm1, %v175_v61, %v168_v62 }
 0x31d   :  { %181 = vst.msk [vmem:[#allocation8] sm:$0x3] %vm180_vm3, %v178_v63 }
 0x31e   :  { %308 = shalt.err (!%p305_p0)
}
 0x31f   :  { %s309_s27 = scalar_lea.hbm %s418_s3, 32 }
 0x320   :  { %p310_p1 = scmp.ne.s32.totalorder %s418_s3, %s309_s27  ;;  %p313_p2 = scmp.lt.u32.totalorder %s309_s27, %s418_s3 }
 0x322   :  { %p315_p3 = pnand %p313_p2, %p310_p1 }
 0x324   :  { %318 = shalt.err (!%p315_p3)
}
 0x325   :  { %201 = dma.vmem_to_hbm [thread:$0]  %s199_s24, 32, %s418_s3, [#allocation9]  }
 0x326   :  { %323 = dma.done.wait [#allocation4], 32  }
 0x327   :  { %324 = vsyncadd [#allocation4], 4294967264 }
 0x328   :  { %325 = dma.done.wait [#allocation9], 32  }
 0x329   :  { %326 = vsyncadd [#allocation9], 4294967264 }
 0x32a   :  { %208 = vsyncpa [#allocation3], 1 }
 0x32b   :  { %209 = vsyncpa [#allocation6], 1 }
 0x32c   :  { %210 = vsyncpa [#allocation4], 1 }
 0x32d   :  { %211 = vsyncpa [#allocation9], 1 }

</bundles_post_ra>
